<compile_context>
chip_gen: v6e
topology: v6e:2x2x1
jax: 0.10.0
libtpu: 0.0.40
codegen_flags: <defaults>
</compile_context>

<pallas_src>
import functools

import jax
import jax.numpy as jnp
from jax.experimental import pallas as pl
from jax.experimental.pallas import tpu as pltpu


_INV_SQRT2 = 0.7071067811865476


def _gelu_exact(x):
    # Matches torch.nn.GELU() default (erf-based, not the tanh approximation).
    return 0.5 * x * (1.0 + jax.lax.erf(x * _INV_SQRT2))


def ffn_kernel(x_ref, w1_ref, b1_ref, w2_ref, b2_ref, o_ref, acc_ref,
               *, approximate_gelu, compute_dtype):
    # x_ref:  (tm, d_model)           -- resident across the j (hidden) axis
    # w1_ref: (d_model, th)  b1_ref: (1, th)      -- streamed hidden slices
    # w2_ref: (th, d_model)  b2_ref: (1, d_model) -- b2 tiny, constant index
    # acc_ref: (tm, d_model) f32 accumulator scratch
    j = pl.program_id(1)

    @pl.when(j == 0)
    def _():
        acc_ref[...] = jnp.zeros_like(acc_ref)

    # First matmul slice: (tm, d_model) @ (d_model, th).  Cast to the compute
    # dtype *inside* the kernel (no separate wrapper-level astype pass over
    # HBM); MXU accumulates in f32.
    xb = x_ref[...]
    w1 = w1_ref[...]
    if xb.dtype != compute_dtype:
        xb = xb.astype(compute_dtype)
    if w1.dtype != compute_dtype:
        w1 = w1.astype(compute_dtype)
    h = jnp.dot(xb, w1, preferred_element_type=jnp.float32)
    h = h + b1_ref[...]                              # bias (f32)
    if approximate_gelu:
        h = jax.nn.gelu(h, approximate=True)         # tanh GELU -> EUP slot
    else:
        h = _gelu_exact(h)                           # torch.nn.GELU() default

    # Dropout: identity at inference time.
    # TODO(synk): training-mode dropout (pltpu.prng_seed/prng_random_bits mask)
    # is not implemented; nn.Dropout is a no-op in eval().

    # Second matmul slice, accumulated over the hidden reduction axis.
    w2 = w2_ref[...]
    if w2.dtype != compute_dtype:
        w2 = w2.astype(compute_dtype)
    acc_ref[...] += jnp.dot(h.astype(compute_dtype), w2,
                            preferred_element_type=jnp.float32)

    @pl.when(j == pl.num_programs(1) - 1)
    def _():
        o_ref[...] = (acc_ref[...] + b2_ref[...]).astype(o_ref.dtype)


def _vmem_capacity_bytes():
    try:
        return int(pltpu.get_tpu_info().vmem_capacity_bytes)
    except Exception:
        return 64 * 1024 * 1024  # conservative fallback (v7x-sized)


def _largest_aligned_divisor(total, target, align):
    """Largest multiple of `align` that is <= target and divides `total`;
    falls back to `total` (full-dim blocks are always legal)."""
    target = min(target, total)
    d = (target // align) * align
    while d >= align:
        if total % d == 0:
            return d
        d -= align
    return total


def ffn_forward(x, w1, b1, w2, b2, *, tm=None, th=None,
                compute_dtype=jnp.bfloat16, approximate_gelu=None):
    """FFN forward. x: (B, S, d_model) -> (B, S, d_model), same dtype as x.

    tm: rows (batch*seq) per tile.  None -> auto per TPU generation.
    th: hidden-dim slice streamed per reduction step.  None -> auto.
    compute_dtype: MXU operand dtype (default bf16; f32 accumulation always).
    approximate_gelu: None -> auto (tanh GELU when d_model < 2048, else exact
        erf, which matches torch.nn.GELU()).
    """
    B, S, d_model = x.shape
    d_hidden = w1.shape[1]
    M = B * S
    out_dtype = x.dtype

    if approximate_gelu is None:
        # Exact erf GELU is ~20-30 VPU ops/element; at small/medium d_model
        # that binds the VALU slot before the MXU on v6e/v7x.  tanh -> EUP.
        approximate_gelu = d_model < 2048

    # ---- per-generation tile defaults + VMEM budget -------------------------
    vmem_phys = _vmem_capacity_bytes()
    is_small_vmem = vmem_phys <= 80 * 1024 * 1024   # v7x: 64 MiB per TC
    vmem_budget = (56 if is_small_vmem else 100) * 1024 * 1024

    tm_target = tm if tm is not None else (512 if is_small_vmem else 1024)
    th_target = th if th is not None else (256 if is_small_vmem else 512)
    if tm is None and is_small_vmem and M >= 16:
        # v7x has 2 TensorCores: keep at least 2 i-tiles so the "parallel"
        # axis actually shards across both cores.
        tm_target = min(tm_target, max(8, M // 2))

    tm_ = _largest_aligned_divisor(M, tm_target, 8)
    th_ = _largest_aligned_divisor(d_hidden, th_target, 128)

    def residency_bytes(tm_v, th_v):
        x_b = 2 * tm_v * d_model * x.dtype.itemsize            # double-buffered
        w1_b = 2 * d_model * th_v * w1.dtype.itemsize
        w2_b = 2 * th_v * d_model * w2.dtype.itemsize
        b_b = 2 * (th_v + d_model) * 4
        out_b = 2 * tm_v * d_model * jnp.dtype(out_dtype).itemsize
        acc_b = tm_v * d_model * 4
        return x_b + w1_b + w2_b + b_b + out_b + acc_b

    # Auto-shrink tiles until the (double-buffered) residency fits the budget.
    prev = None
    while residency_bytes(tm_, th_) > vmem_budget and (tm_, th_) != prev:
        prev = (tm_, th_)
        if tm_ > 8:
            tm_ = _largest_aligned_divisor(M, max(8, tm_ // 2), 8)
        elif th_ > 128:
            th_ = _largest_aligned_divisor(d_hidden, max(128, th_ // 2), 128)
    tm, th = tm_, th_

    assert M % tm == 0 and d_hidden % th == 0
    assert tm == M or tm % 8 == 0
    assert th == d_hidden or th % 128 == 0

    vmem_limit = int(min(vmem_budget,
                         max(32 * 1024 * 1024,
                             int(residency_bytes(tm, th) * 1.25) + (2 << 20))))

    # ---- specs ---------------------------------------------------------------
    x2d = x.reshape(M, d_model)
    b1_2d = b1.reshape(1, d_hidden).astype(jnp.float32)
    b2_2d = b2.reshape(1, d_model).astype(jnp.float32)

    n_i = M // tm
    nj = d_hidden // th
    grid = (n_i, nj)

    def hidden_idx(i, j):
        # Serpentine hidden order: reverse j on odd i tiles so the last weight
        # slab of tile i is reused (no re-DMA) as the first slab of tile i+1.
        rev = i % 2
        return rev * (nj - 1 - j) + (1 - rev) * j

    bytes_accessed = int(
        x2d.size * x2d.dtype.itemsize
        + (w1.size * w1.dtype.itemsize + w2.size * w2.dtype.itemsize) * n_i
        + (b1_2d.size + b2_2d.size) * 4 * n_i
        + M * d_model * jnp.dtype(out_dtype).itemsize)
    cost = pl.CostEstimate(
        flops=int(4 * M * d_model * d_hidden),     # two matmuls
        transcendentals=int(M * d_hidden),         # one erf/tanh per hidden act
        bytes_accessed=bytes_accessed)

    out2d = pl.pallas_call(
        functools.partial(ffn_kernel,
                          approximate_gelu=approximate_gelu,
                          compute_dtype=compute_dtype),
        out_shape=jax.ShapeDtypeStruct((M, d_model), out_dtype),
        grid_spec=pltpu.PrefetchScalarGridSpec(
            num_scalar_prefetch=0,
            grid=grid,
            in_specs=[
                # x tile: block index constant along j -> resident across the
                # whole hidden reduction (no re-DMA per j step).
                pl.BlockSpec((tm, d_model), lambda i, j: (i, 0)),
                # W1 / b1 / W2 hidden-dim slices, streamed (double-buffered),
                # serpentine order across i tiles.
                pl.BlockSpec((d_model, th), lambda i, j: (0, hidden_idx(i, j))),
                pl.BlockSpec((1, th), lambda i, j: (0, hidden_idx(i, j))),
                pl.BlockSpec((th, d_model), lambda i, j: (hidden_idx(i, j), 0)),
                # b2 is tiny and constant-index -> effectively resident.
                pl.BlockSpec((1, d_model), lambda i, j: (0, 0)),
            ],
            out_specs=pl.BlockSpec((tm, d_model), lambda i, j: (i, 0)),
            scratch_shapes=[pltpu.VMEM((tm, d_model), jnp.float32)],
        ),
        compiler_params=pltpu.CompilerParams(
            # M axis shards across TensorCores (v7x megacore); hidden axis is
            # the in-kernel reduction.
            dimension_semantics=("parallel", "arbitrary"),
            vmem_limit_bytes=vmem_limit,
        ),
        cost_estimate=cost,
    )(x2d, w1, b1_2d, w2, b2_2d)

    return out2d.reshape(B, S, d_model)


def ffn_reference(x, w1, b1, w2, b2):
    h = x @ w1 + b1
    h = _gelu_exact(h)
    return h @ w2 + b2


if __name__ == "__main__":
    # Small shapes consistent with the module: (batch, seq, d_model).
    B, S, d_model, d_hidden = 2, 8, 128, 256
    p_dropout = 0.1  # unused at inference time

    key = jax.random.PRNGKey(0)
    kx, k1, k2, k3, k4 = jax.random.split(key, 5)

    x = jax.random.normal(kx, (B, S, d_model), dtype=jnp.float32)
    # "Linear" params stored as (in_features, out_features): y = x @ W + b.
    w1 = jax.random.normal(k1, (d_model, d_hidden), dtype=jnp.float32) * 0.02
    b1 = jax.random.normal(k2, (d_hidden,), dtype=jnp.float32) * 0.02
    w2 = jax.random.normal(k3, (d_hidden, d_model), dtype=jnp.float32) * 0.02
    b2 = jax.random.normal(k4, (d_model,), dtype=jnp.float32) * 0.02

    ref = ffn_reference(x, w1, b1, w2, b2)

    # 1) f32 compute + exact erf GELU; th < d_hidden exercises the hidden-dim
    #    reduction/accumulator.  Tight check vs the torch-matching reference.
    fwd_f32 = jax.jit(functools.partial(
        ffn_forward, th=128, compute_dtype=jnp.float32, approximate_gelu=False))
    out = jax.block_until_ready(fwd_f32(x, w1, b1, w2, b2))
    assert out.shape == (B, S, d_model)
    assert jnp.allclose(out, ref, atol=1e-4, rtol=1e-4), "f32 mismatch vs reference"

    # 2) Default fast path: bf16 MXU compute (f32 accumulation), auto GELU.
    out_fast = jax.block_until_ready(jax.jit(ffn_forward)(x, w1, b1, w2, b2))
    assert out_fast.dtype == x.dtype
    assert jnp.allclose(out_fast, ref, atol=5e-2, rtol=5e-2), "bf16 mismatch vs reference"

    # 3) Larger case: multiple M tiles (exercises serpentine hidden order and
    #    megacore i-axis), default bf16 path.
    B2, S2, dm2, dh2 = 4, 128, 128, 512
    kx2, kw1, kb1, kw2, kb2 = jax.random.split(jax.random.PRNGKey(1), 5)
    x2 = jax.random.normal(kx2, (B2, S2, dm2), dtype=jnp.float32)
    w1b = jax.random.normal(kw1, (dm2, dh2), dtype=jnp.float32) * 0.02
    b1b = jax.random.normal(kb1, (dh2,), dtype=jnp.float32) * 0.02
    w2b = jax.random.normal(kw2, (dh2, dm2), dtype=jnp.float32) * 0.02
    b2b = jax.random.normal(kb2, (dm2,), dtype=jnp.float32) * 0.02
    out2 = jax.block_until_ready(
        jax.jit(functools.partial(ffn_forward, tm=128, th=128))(
            x2, w1b, b1b, w2b, b2b))
    ref2 = ffn_reference(x2, w1b, b1b, w2b, b2b)
    assert jnp.allclose(out2, ref2, atol=5e-2, rtol=5e-2), "larger-shape mismatch"

    print("KERNEL_OK")
</pallas_src>

<mosaic_0001>
module attributes {stable_mosaic.version = 11 : i64} {
  func.func @ffn_kernel(%arg0: i32, %arg1: i32, %arg2: memref<8x128xf32, #tpu.memory_space<vmem>>, %arg3: memref<128x128xf32, #tpu.memory_space<vmem>>, %arg4: memref<1x128xf32, #tpu.memory_space<vmem>>, %arg5: memref<128x128xf32, #tpu.memory_space<vmem>>, %arg6: memref<1x128xf32, #tpu.memory_space<vmem>>, %arg7: memref<8x128xf32, #tpu.memory_space<vmem>>, %arg8: memref<8x128xf32, #tpu.memory_space<vmem>>) attributes {dimension_semantics = [#tpu.dimension_semantics<parallel>, #tpu.dimension_semantics<arbitrary>], iteration_bounds = array<i64: 2, 2>, scalar_prefetch = 0 : i64, scratch_operands = 1 : i64, tpu.core_type = #tpu.core_type<tc>, window_params = [{transform_indices = @transform_0, window_bounds = array<i64: 8, 128>}, {transform_indices = @transform_1, window_bounds = array<i64: 128, 128>}, {transform_indices = @transform_2, window_bounds = array<i64: 1, 128>}, {transform_indices = @transform_3, window_bounds = array<i64: 128, 128>}, {pipeline_mode = #tpu.pipeline_mode<synchronous>, transform_indices = @transform_4, window_bounds = array<i64: 1, 128>}, {transform_indices = @transform_5, window_bounds = array<i64: 8, 128>}]} {
    %c0_i32 = arith.constant 0 : i32
    %0 = arith.cmpi eq, %arg1, %c0_i32 : i32
    %1 = arith.extui %0 : i1 to i32
    %c0_i32_0 = arith.constant 0 : i32
    %2 = arith.cmpi ne, %1, %c0_i32_0 : i32
    scf.if %2 {
      %cst_17 = arith.constant 0.000000e+00 : f32
      %25 = vector.broadcast %cst_17 : f32 to vector<8x128xf32>
      %c0_18 = arith.constant 0 : index
      %c0_19 = arith.constant 0 : index
      %26 = vector.load %arg8[%c0_18, %c0_19] : memref<8x128xf32, #tpu.memory_space<vmem>>, vector<8x128xf32>
      tpu.vector_store %arg8[%c0_18, %c0_19], %25 {strides = array<i32>} : memref<8x128xf32, #tpu.memory_space<vmem>>, vector<8x128xf32>,
    } else {
    }
    %c0 = arith.constant 0 : index
    %c0_1 = arith.constant 0 : index
    %3 = vector.load %arg2[%c0, %c0_1] : memref<8x128xf32, #tpu.memory_space<vmem>>, vector<8x128xf32>
    %c0_2 = arith.constant 0 : index
    %c0_3 = arith.constant 0 : index
    %4 = vector.load %arg3[%c0_2, %c0_3] : memref<128x128xf32, #tpu.memory_space<vmem>>, vector<128x128xf32>
    %cst = arith.constant dense<0.000000e+00> : vector<8x128xf32>
    %5 = tpu.matmul %3, %4, %cst {dimension_numbers = #tpu.dot_dimension_numbers<[1], [0], [0], [1], [0, 0, 1, 1], [], []>} : vector<8x128xf32>, vector<128x128xf32>, vector<8x128xf32> -> vector<8x128xf32>
    %c0_4 = arith.constant 0 : index
    %c0_5 = arith.constant 0 : index
    %6 = vector.load %arg4[%c0_4, %c0_5] : memref<1x128xf32, #tpu.memory_space<vmem>>, vector<1x128xf32>
    %7 = vector.broadcast %6 : vector<1x128xf32> to vector<8x128xf32>
    %8 = arith.addf %5, %7 : vector<8x128xf32>
    %cst_6 = arith.constant 5.000000e-01 : f32
    %9 = vector.broadcast %cst_6 : f32 to vector<8x128xf32>
    %10 = arith.mulf %9, %8 : vector<8x128xf32>
    %cst_7 = arith.constant 0.707106769 : f32
    %11 = vector.broadcast %cst_7 : f32 to vector<8x128xf32>
    %12 = arith.mulf %8, %11 : vector<8x128xf32>
    %13 = math.erf %12 : vector<8x128xf32>
    %cst_8 = arith.constant 1.000000e+00 : f32
    %14 = vector.broadcast %cst_8 : f32 to vector<8x128xf32>
    %15 = arith.addf %14, %13 : vector<8x128xf32>
    %16 = arith.mulf %10, %15 : vector<8x128xf32>
    %c0_9 = arith.constant 0 : index
    %c0_10 = arith.constant 0 : index
    %17 = vector.load %arg5[%c0_9, %c0_10] : memref<128x128xf32, #tpu.memory_space<vmem>>, vector<128x128xf32>
    %c0_11 = arith.constant 0 : index
    %c0_12 = arith.constant 0 : index
    %18 = vector.load %arg8[%c0_11, %c0_12] : memref<8x128xf32, #tpu.memory_space<vmem>>, vector<8x128xf32>
    %cst_13 = arith.constant dense<0.000000e+00> : vector<8x128xf32>
    %19 = tpu.matmul %16, %17, %cst_13 {dimension_numbers = #tpu.dot_dimension_numbers<[1], [0], [0], [1], [0, 0, 1, 1], [], []>} : vector<8x128xf32>, vector<128x128xf32>, vector<8x128xf32> -> vector<8x128xf32>
    %20 = arith.addf %18, %19 : vector<8x128xf32>
    %c0_14 = arith.constant 0 : index
    %c0_15 = arith.constant 0 : index
    %21 = vector.load %arg8[%c0_14, %c0_15] : memref<8x128xf32, #tpu.memory_space<vmem>>, vector<8x128xf32>
    tpu.vector_store %arg8[%c0_14, %c0_15], %20 {strides = array<i32>} : memref<8x128xf32, #tpu.memory_space<vmem>>, vector<8x128xf32>,
    %c1_i32 = arith.constant 1 : i32
    %22 = arith.cmpi eq, %arg1, %c1_i32 : i32
    %23 = arith.extui %22 : i1 to i32
    %c0_i32_16 = arith.constant 0 : i32
    %24 = arith.cmpi ne, %23, %c0_i32_16 : i32
    scf.if %24 {
      %c0_17 = arith.constant 0 : index
      %c0_18 = arith.constant 0 : index
      %25 = vector.load %arg8[%c0_17, %c0_18] : memref<8x128xf32, #tpu.memory_space<vmem>>, vector<8x128xf32>
      %c0_19 = arith.constant 0 : index
      %c0_20 = arith.constant 0 : index
      %26 = vector.load %arg6[%c0_19, %c0_20] : memref<1x128xf32, #tpu.memory_space<vmem>>, vector<1x128xf32>
      %27 = vector.broadcast %26 : vector<1x128xf32> to vector<8x128xf32>
      %28 = arith.addf %25, %27 : vector<8x128xf32>
      %c0_21 = arith.constant 0 : index
      %c0_22 = arith.constant 0 : index
      %29 = vector.load %arg7[%c0_21, %c0_22] : memref<8x128xf32, #tpu.memory_space<vmem>>, vector<8x128xf32>
      tpu.vector_store %arg7[%c0_21, %c0_22], %28 {strides = array<i32>} : memref<8x128xf32, #tpu.memory_space<vmem>>, vector<8x128xf32>,
    } else {
    }
    return
  }
  func.func @transform_0(%arg0: i32, %arg1: i32) -> (i32, i32) {
    %c0_i32 = arith.constant 0 : i32
    %c0_i32_0 = arith.constant 0 : i32
    return %arg0, %c0_i32 : i32, i32
  }
  func.func @transform_1(%arg0: i32, %arg1: i32) -> (i32, i32) {
    %c2_i32 = arith.constant 2 : i32
    %c0_i32 = arith.constant 0 : i32
    %0 = arith.cmpi eq, %c2_i32, %c0_i32 : i32
    %c1_i32 = arith.constant 1 : i32
    %1 = arith.select %0, %c1_i32, %c2_i32 : i32
    %2 = arith.remsi %arg0, %1 : i32
    %c0_i32_0 = arith.constant 0 : i32
    %3 = arith.cmpi ne, %2, %c0_i32_0 : i32
    %c0_i32_1 = arith.constant 0 : i32
    %4 = arith.cmpi slt, %2, %c0_i32_1 : i32
    %c0_i32_2 = arith.constant 0 : i32
    %5 = arith.cmpi slt, %1, %c0_i32_2 : i32
    %6 = arith.xori %4, %5 : i1
    %7 = arith.andi %6, %3 : i1
    %8 = arith.addi %2, %1 : i32
    %9 = arith.select %7, %8, %2 : i32
    %c1_i32_3 = arith.constant 1 : i32
    %10 = arith.subi %c1_i32_3, %arg1 : i32
    %11 = arith.muli %9, %10 : i32
    %c1_i32_4 = arith.constant 1 : i32
    %12 = arith.subi %c1_i32_4, %9 : i32
    %13 = arith.muli %12, %arg1 : i32
    %14 = arith.addi %11, %13 : i32
    %c0_i32_5 = arith.constant 0 : i32
    %c0_i32_6 = arith.constant 0 : i32
    return %c0_i32_5, %14 : i32, i32
  }
  func.func @transform_2(%arg0: i32, %arg1: i32) -> (i32, i32) {
    %c2_i32 = arith.constant 2 : i32
    %c0_i32 = arith.constant 0 : i32
    %0 = arith.cmpi eq, %c2_i32, %c0_i32 : i32
    %c1_i32 = arith.constant 1 : i32
    %1 = arith.select %0, %c1_i32, %c2_i32 : i32
    %2 = arith.remsi %arg0, %1 : i32
    %c0_i32_0 = arith.constant 0 : i32
    %3 = arith.cmpi ne, %2, %c0_i32_0 : i32
    %c0_i32_1 = arith.constant 0 : i32
    %4 = arith.cmpi slt, %2, %c0_i32_1 : i32
    %c0_i32_2 = arith.constant 0 : i32
    %5 = arith.cmpi slt, %1, %c0_i32_2 : i32
    %6 = arith.xori %4, %5 : i1
    %7 = arith.andi %6, %3 : i1
    %8 = arith.addi %2, %1 : i32
    %9 = arith.select %7, %8, %2 : i32
    %c1_i32_3 = arith.constant 1 : i32
    %10 = arith.subi %c1_i32_3, %arg1 : i32
    %11 = arith.muli %9, %10 : i32
    %c1_i32_4 = arith.constant 1 : i32
    %12 = arith.subi %c1_i32_4, %9 : i32
    %13 = arith.muli %12, %arg1 : i32
    %14 = arith.addi %11, %13 : i32
    %c0_i32_5 = arith.constant 0 : i32
    %c0_i32_6 = arith.constant 0 : i32
    return %c0_i32_5, %14 : i32, i32
  }
  func.func @transform_3(%arg0: i32, %arg1: i32) -> (i32, i32) {
    %c2_i32 = arith.constant 2 : i32
    %c0_i32 = arith.constant 0 : i32
    %0 = arith.cmpi eq, %c2_i32, %c0_i32 : i32
    %c1_i32 = arith.constant 1 : i32
    %1 = arith.select %0, %c1_i32, %c2_i32 : i32
    %2 = arith.remsi %arg0, %1 : i32
    %c0_i32_0 = arith.constant 0 : i32
    %3 = arith.cmpi ne, %2, %c0_i32_0 : i32
    %c0_i32_1 = arith.constant 0 : i32
    %4 = arith.cmpi slt, %2, %c0_i32_1 : i32
    %c0_i32_2 = arith.constant 0 : i32
    %5 = arith.cmpi slt, %1, %c0_i32_2 : i32
    %6 = arith.xori %4, %5 : i1
    %7 = arith.andi %6, %3 : i1
    %8 = arith.addi %2, %1 : i32
    %9 = arith.select %7, %8, %2 : i32
    %c1_i32_3 = arith.constant 1 : i32
    %10 = arith.subi %c1_i32_3, %arg1 : i32
    %11 = arith.muli %9, %10 : i32
    %c1_i32_4 = arith.constant 1 : i32
    %12 = arith.subi %c1_i32_4, %9 : i32
    %13 = arith.muli %12, %arg1 : i32
    %14 = arith.addi %11, %13 : i32
    %c0_i32_5 = arith.constant 0 : i32
    %c0_i32_6 = arith.constant 0 : i32
    return %14, %c0_i32_5 : i32, i32
  }
  func.func @transform_4(%arg0: i32, %arg1: i32) -> (i32, i32) {
    %c0_i32 = arith.constant 0 : i32
    %c0_i32_0 = arith.constant 0 : i32
    %c0_i32_1 = arith.constant 0 : i32
    return %c0_i32, %c0_i32_0 : i32, i32
  }
  func.func @transform_5(%arg0: i32, %arg1: i32) -> (i32, i32) {
    %c0_i32 = arith.constant 0 : i32
    %c0_i32_0 = arith.constant 0 : i32
    return %arg0, %c0_i32 : i32, i32
  }
}

</mosaic_0001>

<bundles_post_ra>
// kernel: ffn_forward.1
= control target key start
LH: loop header
LB: loop body
LE: loop exit
PB: predicated region body
PF: predicated region fallthrough
CT: control target
= control target key end

     0   :  { %s1882_s0 = inlined_call_operand.hbm [shape: f32[16,128], index: 0, kind: input, shape index: {}]   ;;  %s1883_s1 = inlined_call_operand.hbm [shape: f32[128,256], index: 1, kind: input, shape index: {}]   ;;  %s1884_s2 = inlined_call_operand.vmem [shape: f32[1,256], index: 2, kind: input, shape index: {}]   ;;  %s1885_s3 = inlined_call_operand.hbm [shape: f32[256,128], index: 3, kind: input, shape index: {}]   ;;  %s1886_s4 = inlined_call_operand.vmem [shape: f32[1,128], index: 4, kind: input, shape index: {}]   ;;  %s1887_s5 = inlined_call_operand.hbm [shape: f32[16,128], index: 5, kind: output, shape index: {}]  }
   0x1   :  { %1906 = sst [smem:[#allocation24_spill]] %s1883_s1 }
   0x2   :  { %1907 = sst [smem:[#allocation25_spill]] %s1884_s2 }
   0x3   :  { %1908 = sst [smem:[#allocation26_spill]] %s1885_s3 }
   0x4   :  { %1909 = sst [smem:[#allocation27_spill]] %s1886_s4 }
   0x5   :  { %1910 = sst [smem:[#allocation28_spill]] %s1887_s5 }
   0x6   :  { %10 = vsyncpa [#allocation4], 0 }
   0x7   :  { %12 = vsyncpa [#allocation4 + $0x1], 0 }
   0x8   :  { %13 = vsyncpa [#allocation7], 0 }
   0x9   :  { %15 = vsyncpa [#allocation7 + $0x1], 0 }
   0xa   :  { %16 = vsyncpa [#allocation5], 0 }
   0xb   :  { %18 = vsyncpa [#allocation5 + $0x1], 0  ;;  %s1480_s18 = smov 0   ;;  %s1482_s19 = smov 0  }
   0xc   :  { %s1484_s20 = smov 0   ;;  %s1486_s21 = smov 0  }
   0xd   :  { %s1488_s22 = smov 0   ;;  %s1490_s23 = smov 0  }
   0xe   :  { %s1492_s24 = smov 0   ;;  %s1494_s25 = smov 0  }
   0xf   :  { %s1496_s26 = smov 0   ;;  %s1498_s27 = smov 0  }
  0x10   :  { %s1500_s28 = smov 0  }
  0x11 LB: > { %1911 = sst [smem:[#allocation13_spill]] %s1406_s20  ;;  %s33_s29 = sadd.s32 1, %s1430_s26  ;;  %s1438_s28 = sphi %s1500_s28, %s24_s28   ;;  %s1434_s27 = sphi %s1498_s27, %s1960_s27   ;;  %s1430_s26 = sphi %s1496_s26, %s1959_s26   ;;  %s1426_s25 = sphi %s1494_s25, %s1958_s25   ;;  %s1422_s24 = sphi %s1492_s24, %s1957_s24   ;;  %s1418_s23 = sphi %s1490_s23, %s1956_s23   ;;  %s1414_s22 = sphi %s1488_s22, %s1964_s22   ;;  %s1410_s21 = sphi %s1486_s21, %s1963_s21   ;;  %s1406_s20 = sphi %s1484_s20, %s1954_s20   ;;  %s1402_s19 = sphi %s1482_s19, %s1962_s19   ;;  %s1398_s18 = sphi %s1480_s18, %s1961_s18  }
  0x12   : > { %1912 = sst [smem:[#allocation14_spill]] %s1418_s23  ;;  %s36_s30 = sadd.s32 1, %s1434_s27 }
  0x13   : > { %1913 = sst [smem:[#allocation15_spill]] %s1422_s24  ;;  %p34_p0 = scmp.ge.s32.totalorder %s33_s29, 2 }
  0x14   : > { %1914 = sst [smem:[#allocation16_spill]] %s1426_s25  ;;  %p51_p1 = scmp.eq.s32.totalorder %s1438_s28, 0 }
  0x15   : > { %1915 = sst [smem:[#allocation17_spill]] %s1430_s26  ;;  %s67_s6 = ssub.s32 0, %s1434_s27 }
  0x16   : > { %1916 = sst [smem:[#allocation18_spill]] %s1434_s27  ;;  %s1966_s29 = smov (%p34_p0, %s33_s29), 0 }
  0x17   : > { %1917 = sst [smem:[#allocation19_spill]] %s1966_s29  ;;  %s1968_s30 = smov (!%p34_p0, %s36_s30), %s1434_s27 }
  0x18   : > { %s956_s7 = smin.u32 %s1434_s27, %s67_s6  ;;  %s78_s8 = ssub.s32 1, %s1430_s26 }
  0x19   : > { %p38_p2 = scmp.ge.s32.totalorder %s1968_s30, 2  ;;  %s69_s9 = sand.u32 1, %s956_s7  }
  0x1a   : > { %s95_s10 = ssub.s32 1, %s1966_s29  ;;  %p958_p3 = scmp.lt.s32.totalorder %s69_s9, 0 }
  0x1b   : > { %s1970_s30 = smov (%p38_p2, %s1968_s30), 0  ;;  %s76_s12 = sadd.s32 2, %s69_s9 }
  0x1c   : > { %1918 = sst [smem:[#allocation20_spill]] %s1970_s30  ;;  %s84_s11 = ssub.s32 0, %s1970_s30 }
  0x1d   : > { %s959_s13 = smin.u32 %s84_s11, %s1970_s30  ;;  %s103_s14 = sadd.s32 1, %s1406_s20 }
  0x1e   : > { %s1972_s12 = smov (!%p958_p3, %s76_s12), %s69_s9  ;;  %s86_s15 = sand.u32 1, %s959_s13  }
  0x1f   : > { %p110_p4 = scmp.ne.s32.totalorder %s1406_s20, %s1402_s19  ;;  %s79_s16 = smul.u32 %s78_s8, %s1972_s12 }
  0x20   : > { %s80_s17 = ssub.s32 1, %s1972_s12  ;;  %p961_p6 = scmp.lt.s32.totalorder %s86_s15, 0 }
  0x21   : > { %s81_s6 = smul.u32 %s1430_s26, %s80_s17  ;;  %p1557_p5 = por %p110_p4, %p51_p1 }
  0x22   : > { %s93_s4 = sadd.s32 2, %s86_s15  ;;  %p1893_p7 = scmp.lt.s32.totalorder %s1438_s28, 4 }
  0x23   : > { %s1553_s7 = sadd.s32 %s81_s6, %s79_s16  ;;  %s1974_s4 = smov (!%p961_p6, %s93_s4), %s86_s15 }
  0x24   : > { %s328_s9 = sand.u32 1, %s1438_s28   ;;  %s330_s8 = sand.u32 1, %s1406_s20  }
  0x25   : > { %s96_s11 = smul.u32 %s95_s10, %s1974_s4  ;;  %s97_s12 = ssub.s32 1, %s1974_s4 }
  0x26   : > { %s98_s13 = smul.u32 %s97_s12, %s1966_s29  ;;  %s1565_s16 = sshll.u32 %s330_s8, 7 }
  0x27   : > { %s982_s17 = sshll.u32 %s1553_s7, 7  ;;  %s1920_s1 = sld [smem:[#allocation24_spill]] }
  0x28   : > { %s99_s6 = sadd.s32 %s98_s13, %s96_s11  ;;  %s332_s15 = scalar_lea.vmem [#allocation6], %s1565_s16 }
  0x29   : > { %s100_s26 = ssub.s32 %s1553_s7, %s99_s6  ;;  %s355_s3 = sshll.u32 %s332_s15, 4  ;;  %s1575_s3 = int_to_ptr.vmem [resolvable:$true] %s355_s3 }
  0x2a   : > { %p101_p8 = scmp.eq.s32.totalorder %s100_s26, 0  ;;  %p1581_p9 = pnand %p1893_p7, %p1557_p5 }
  0x2b   : > { %s1588_s2 = scalar_lea.sflag [#allocation7], %s328_s9 }
  0x2c   : > { %s1586_s10 = scalar_select %p101_p8, %s1406_s20, %s103_s14  }
  0x2d   : > { %s1572_s25 = scalar_lea.hbm %s1920_s1, %s982_s17  ;;  %p1902_p11 = pneg %p1581_p9 }
  0x2e   : > { %1922 = sst [smem:[#allocation21_spill]] %s1586_s10  ;;  %s1230_s24 = scalar_lea.hbm %s1572_s25, 2048 }
  0x2f   : > { %p1231_p10 = scmp.ne.s32.totalorder %s1572_s25, %s1230_s24  ;;  %s1235_s8 = scalar_lea.hbm %s1920_s1, 4096 }
  0x30   : > { %p1236_p0 = scmp.lt.s32.totalorder %s1572_s25, %s1920_s1  ;;  %p1237_p2 = scmp.lt.s32.totalorder %s1235_s8, %s1230_s24 }
  0x31   : > { %p1233_p12 = pnand %p1902_p11, %p1231_p10 }
  0x32   : > { %p1238_p3 = por %p1237_p2, %p1236_p0 }
  0x33   : > { %p1234_p13 = pneg %p1233_p12 }
  0x35   : > { %p1239_p4 = pnand %p1238_p3, %p1234_p13 }
  0x37   : > { %1242 = shalt.err (!%p1239_p4)
}
  0x38   : > { %s1243_s14 = scalar_lea.vmem %s1575_s3, 2048  ;;  %s1440_s9 = smov [#allocation6]  }
  0x39   : > { %p1244_p5 = scmp.ne.s32.totalorder %s1575_s3, %s1243_s14  ;;  %s1248_s13 = sshll.u32 %s1440_s9, 4  ;;  %s1249_s13 = int_to_ptr.vmem [resolvable:$false] %s1248_s13 }
  0x3a   : > { %s1250_s17 = scalar_lea.vmem %s1249_s13, 4096  ;;  %p1251_p10 = scmp.lt.s32.totalorder %s1575_s3, %s1249_s13 }
  0x3b   : > { %p1246_p6 = pnand %p1244_p5, %p1902_p11  ;;  %p1252_p12 = scmp.lt.s32.totalorder %s1250_s17, %s1243_s14 }
  0x3d   : > { %p1247_p8 = pneg %p1246_p6  ;;  %p1253_p7 = por %p1252_p12, %p1251_p10 }
  0x3f   : > { %p1254_p0 = pnand %p1253_p7, %p1247_p8 }
  0x41   : > { %1257 = shalt.err (!%p1254_p0)
}
  0x42   : > { %s1441_s6 = smov 256   ;;  %s1894_s15 = smov 128  }
  0x43   : > { %s1895_s24 = smov 8   ;;  %p989_p7 = scmp.ge.s32.totalorder %s1438_s28, 1 }
  0x44   : > { %1124 = dma.hbm_to_vmem [thread:$0]  (!%p1581_p9), %s1572_s25, 2048, %s1575_s3, %s1588_s2, %s1441_s6, %s1894_s15, %s1895_s24  }
  0x45   : > { %p441_p13 = scmp.lt.s32.totalorder %s1438_s28, 5  ;;  %s1624_s26 = sadd.s32 4294967295, %s1438_s28  }
  0x46   : > { %s955_s8 = sadd.s32 4294967294, %s1438_s28   ;;  %s40_s11 = ssub.s32 %s1434_s27, %s1970_s30 }
  0x47   : > { %p1619_p2 = pnand %p989_p7, %p441_p13  ;;  %p41_p3 = scmp.eq.s32.totalorder %s40_s11, 0 }
  0x48   : > { %s43_s12 = sadd.s32 1, %s1418_s23  ;;  %p50_p4 = scmp.ne.s32.totalorder %s1418_s23, %s1414_s22 }
  0x49   : > { %s1923_s5 = scalar_select %p1619_p2, 1, 0 }
  0x4a   : > { %p56_p5 = scmp.ne.s32.totalorder %s1414_s22, %s1410_s21  ;;  %p1639_p6 = por %p51_p1, %p50_p4 }
  0x4b   : > { %s1635_s14 = scalar_select %p41_p3, %s1418_s23, %s43_s12  }
  0x4c   : > { %p57_p8 = scmp.eq.s32.totalorder %s1624_s26, 0  ;;  %p116_p10 = scmp.ne.s32.totalorder %s1402_s19, %s1398_s18 }
  0x4d   : > { %1924 = sst [smem:[#allocation22_spill]] %s1635_s14  ;;  %p281_p12 = scmp.eq.s32.totalorder %s1624_s26, 3 }
  0x4e   : > { %p1647_p0 = por %p57_p8, %p56_p5  ;;  %p287_p7 = scmp.eq.s32.totalorder %s955_s8, 3 }
  0x4f   : > { %p1651_p13 = por %p116_p10, %p57_p8  ;;  %p1655_p3 = por %p281_p12, %p50_p4 }
  0x50   : > { %s1926_s25 = scalar_select %p1647_p0, 1, 0 }
  0x51   : > { %s1927_s9 = scalar_select %p1651_p13, 1, 0 }
  0x52   : > { %s1928_s13 = scalar_select %p1655_p3, 1, 0 }
  0x53   : > { %p1659_p1 = por %p287_p7, %p56_p5  ;;  %s310_s6 = sand.u32 1, %s1418_s23  }
  0x54   : > { %s976_s18 = sshll.u32 %s310_s6, 3  ;;  %s977_s11 = sshll.u32 %s1434_s27, 7 }
  0x55   : > { %s1929_s17 = scalar_select %p1659_p1, 1, 0 }
  0x56   : > { %s319_s24 = scalar_lea.hbm %s1882_s0, %s977_s11  ;;  %s314_s8 = scalar_lea.vmem [#allocation3], %s976_s18 }
  0x57   : > { %1930 = sst [smem:[#allocation23_spill]] %s1929_s17  ;;  %s321_s1 = sshll.u32 %s314_s8, 4  ;;  %s322_s1 = int_to_ptr.vmem [resolvable:$true] %s321_s1 }
  0x58   : > { %p1931_p8 = scmp.lt.s32.totalorder %s1438_s28, 4  ;;  %s1005_s29 = sshll.u32 %s1553_s7, 11 }
  0x59   : > { %s1933_s23 = sld [smem:[#allocation26_spill]]  ;;  %s311_s27 = scalar_lea.sflag [#allocation4], %s310_s6 }
  0x5a   : > { %p1672_p4 = pnand %p1931_p8, %p1639_p6  ;;  %s1271_s15 = scalar_lea.vmem %s322_s1, 128 }
  0x5b   : > { %p1272_p10 = scmp.ne.s32.totalorder %s322_s1, %s1271_s15  ;;  %s1444_s3 = smov [#allocation3]  }
  0x5c   : > { %p1260_p5 = pneg %p1672_p4  ;;  %s1276_s18 = sshll.u32 %s1444_s3, 4  ;;  %s1277_s18 = int_to_ptr.vmem [resolvable:$false] %s1276_s18 }
  0x5d   : > { %s1278_s11 = scalar_lea.vmem %s1277_s18, 256  ;;  %p1279_p6 = scmp.lt.s32.totalorder %s322_s1, %s1277_s18 }
  0x5e   : > { %p1274_p12 = pnand %p1272_p10, %p1260_p5  ;;  %p1280_p8 = scmp.lt.s32.totalorder %s1278_s11, %s1271_s15 }
  0x5f   : > { %s1934_s17 = smov %s1933_s23  ;;  %s1680_s20 = scalar_lea.hbm %s1933_s23, %s1005_s29 }
  0x60   : > { %p1275_p7 = pneg %p1274_p12  ;;  %p1281_p11 = por %p1280_p8, %p1279_p6 }
  0x62   : > { %p1282_p1 = pnand %p1281_p11, %p1275_p7 }
  0x64   : > { %1285 = shalt.err (!%p1282_p1)
}
  0x65   : > { %1121 = dma.hbm_to_vmem [thread:$0]  (!%p1672_p4), %s319_s24, 128, %s322_s1, %s311_s27  }
  0x66   : > { %s409_s23 = scalar_lea.vmem [#allocation8], %s1565_s16  ;;  %s1286_s7 = scalar_lea.hbm %s1680_s20, 2048 }
  0x67   : > { %s433_s29 = sshll.u32 %s409_s23, 4  ;;  %p1287_p5 = scmp.ne.s32.totalorder %s1680_s20, %s1286_s7  ;;  %s434_s29 = int_to_ptr.vmem [resolvable:$true] %s433_s29 }
  0x68   : > { %p1935_p10 = pneg %p1581_p9  ;;  %s1291_s6 = scalar_lea.hbm %s1934_s17, 4096 }
  0x69   : > { %p1292_p11 = scmp.lt.s32.totalorder %s1680_s20, %s1934_s17  ;;  %p1293_p1 = scmp.lt.s32.totalorder %s1291_s6, %s1286_s7 }
  0x6a   : > { %p1289_p12 = pnand %p1287_p5, %p1935_p10 }
  0x6b   : > { %p1294_p7 = por %p1293_p1, %p1292_p11 }
  0x6c   : > { %p1290_p3 = pneg %p1289_p12 }
  0x6e   : > { %p1295_p4 = pnand %p1294_p7, %p1290_p3 }
  0x70   : > { %1298 = shalt.err (!%p1295_p4)
}
  0x71   : > { %s1299_s1 = scalar_lea.vmem %s434_s29, 2048  ;;  %p1936_p8 = pmov %p1935_p10 }
  0x72   : > { %p1300_p6 = scmp.ne.s32.totalorder %s434_s29, %s1299_s1  ;;  %s1445_s27 = smov [#allocation8]  }
  0x73   : > { %s1304_s16 = sshll.u32 %s1445_s27, 4  ;;  %s1305_s16 = int_to_ptr.vmem [resolvable:$false] %s1304_s16 }
  0x74   : > { %p1302_p13 = pnand %p1300_p6, %p1936_p8  ;;  %s1306_s24 = scalar_lea.vmem %s1305_s16, 4096 }
  0x75   : > { %p1307_p10 = scmp.lt.s32.totalorder %s434_s29, %s1305_s16  ;;  %p1308_p12 = scmp.lt.s32.totalorder %s1306_s24, %s1299_s1 }
  0x76   : > { %p1303_p5 = pneg %p1302_p13 }
  0x77   : > { %p1309_p0 = por %p1308_p12, %p1307_p10 }
  0x79   : > { %p1310_p2 = pnand %p1309_p0, %p1303_p5 }
  0x7b   : > { %1313 = shalt.err (!%p1310_p2)
}
  0x7c   : > { %s1937_s8 = smov 8   ;;  %s1938_s15 = smov 128  }
  0x7d   : > { %1127 = dma.hbm_to_vmem [thread:$0]  (!%p1581_p9), %s1680_s20, 2048, %s434_s29, %s1588_s2, %s1938_s15, %s1938_s15, %s1937_s8  }
  0x7e   : > { %p1939_p3 = scmp.ne.s32.totalorder %s1923_s5, 0 }
  0x7f   : > { %s1712_s3 = sand.u32 (!%p1939_p3), 1, %s1414_s22   ;;  %p1940_p2 = scmp.ne.s32.totalorder (!%p1939_p3), %s1926_s25, 0 }
  0x80   : > { %445 = sbr.rel (%p1939_p3) target bundleno = 643 (0x283), region = 40  ;;  %s990_s18 = sshll.u32 (!%p1939_p3), %s1712_s3, 3 }
  0x81   : > { %s448_s11 = scalar_lea.sflag (!%p1939_p3), [#allocation4], %s1712_s3  ;;  %s1718_s4 = scalar_lea.vmem (!%p1939_p3), [#allocation3], %s990_s18 }
  0x85   : > { %1385 = dma.done.wait (%p1940_p2), %s448_s11, 128  }
  0x86   : > { %1387 = vsyncadd (%p1940_p2), %s448_s11, 4294967168  ;;  %s456_s20 = sand.u32 1, %s1624_s26   ;;  %s458_s2 = sand.u32 1, %s1402_s19  }
  0x87   : > { %s991_s5 = sshll.u32 %s458_s2, 7  ;;  %s457_s23 = scalar_lea.sflag [#allocation7], %s456_s20 }
  0x88   : > { %s1726_s29 = scalar_lea.vmem [#allocation6], %s991_s5  ;;  %p1941_p9 = scmp.ne.s32.totalorder %s1927_s9, 0 }
  0x8a   : > { %1389 = dma.done.wait (%p1941_p9), %s457_s23, 4096  }
  0x8b   : > { %1391 = vsyncadd (%p1941_p9), %s457_s23, 4294963200  ;;  %s1942_s7 = sld [smem:[#allocation16_spill]]  ;;  %s1743_s20 = scalar_lea.vmem [#allocation8], %s991_s5 }
  0x8c   : > { %s1943_s10 = sld [smem:[#allocation15_spill]]  ;;  %s1747_s2 = scalar_lea.vmem [#allocation9], %s990_s18 }
  0x8d   : > { %s1944_s15 = sld [smem:[#allocation25_spill]] }
  0x91   : > { %p543_p0 = scmp.lt.s32.totalorder %s1942_s7, 0  ;;  %s544_s25 = ssub.s32 0, %s1942_s7 }
  0x92   : > { %s994_s14 = smin.u32 %s1942_s7, %s544_s25  ;;  %s555_s12 = ssub.s32 1, %s1943_s10 }
  0x93   : > { %s546_s26 = sand.u32 1, %s994_s14   ;;  %p997_p1 = scmp.ne.s32.totalorder %s1943_s10, 0 }
  0x94   : > { %s547_s6 = ssub.s32 0, %s546_s26 }
  0x95   : > { %s1976_s6 = smov (!%p543_p0, %s547_s6), %s546_s26 }
  0x96   : > { %p996_p13 = scmp.lt.s32.totalorder %s1976_s6, 0  ;;  %s553_s30 = sadd.s32 2, %s1976_s6 }
  0x98   : > { %s1978_s30 = smov (!%p996_p13, %s553_s30), %s1976_s6 }
  0x99   : > { %s556_s1 = smul.u32 %s555_s12, %s1978_s30  ;;  %s557_s27 = ssub.s32 1, %s1978_s30 }
  0x9a   : > { %s558_s9 = smul.u32 %s1943_s10, %s557_s27 }
  0x9c   : > { %s559_s16 = sadd.s32 %s558_s9, %s556_s1  ;;  %601 = sbr.rel (%p997_p1) target bundleno = 163 (0xa3), region = 56 }
  0x9d   : > { %p560_p11 = scmp.lt.s32.totalorder %s559_s16, 1 }
  0x9f   : > { %s1980_s16 = smov (!%p560_p11, %s559_s16), 1 }
  0xa0   : > { %s562_s11 = scalar_lea.vmem %s1944_s15, %s1980_s16 }
  0xa1   : > { %v1446_v0 = vmov 0.0  }
  0xa2   : > { %602 = vst [vmem:[#allocation2] sm:$0xff] %v1446_v0 }
  0xa3 PF: > { %v619_v1 = vld [vmem:[%s1726_s29 + $0x78] sm:$0xff]  ;;  %v1447_v2 = vmov 0.0   ;;  %v618_v3 = vld [vmem:[%s1726_s29 + $0x70] sm:$0xff]  ;;  %vm1448_vm0 = vmmov 0   ;;  %v617_v4 = vld [vmem:[%s1726_s29 + $0x68] sm:$0xff]  ;;  %s1946_s23 = sld [smem:[#allocation15_spill]] }
  0xa4   : > { %1040 = vmatprep.subr.mxu0 %v1447_v2  ;;  %1072 = vmatprep.mubr.msk.f32.mxu0 %vm1448_vm0, %v1447_v2  ;;  %v616_v5 = vld [vmem:[%s1726_s29 + $0x60] sm:$0xff]  ;;  %v717_v6 = vld [vmem:[%s1743_s20 + $0x78] sm:$0xff]  ;;  %v716_v7 = vld [vmem:[%s1743_s20 + $0x70] sm:$0xff] }
  0xa5   : > { %1041 = vmatpush3.msra.mxu0 %v619_v1  ;;  %1075 = vmatprep.subr.mxu1 %v1447_v2  ;;  %v615_v8 = vld [vmem:[%s1726_s29 + $0x58] sm:$0xff]  ;;  %v715_v9 = vld [vmem:[%s1743_s20 + $0x68] sm:$0xff]  ;;  %v614_v10 = vld [vmem:[%s1726_s29 + $0x50] sm:$0xff] }
  0xa6   : > { %1042 = vmatprep.subr.mxu0 %v1447_v2  ;;  %1107 = vmatprep.mubr.msk.f32.mxu1 %vm1448_vm0, %v1447_v2  ;;  %v714_v11 = vld [vmem:[%s1743_s20 + $0x60] sm:$0xff]  ;;  %v613_v12 = vld [vmem:[%s1726_s29 + $0x48] sm:$0xff]  ;;  %v611_v14 = vld [vmem:[%s1726_s29 + $0x38] sm:$0xff] }
  0xa7   : > { %1043 = vmatpush3.msra.mxu0 %v618_v3  ;;  %1076 = vmatpush3.msra.mxu1 %v717_v6  ;;  %v612_v13 = vld [vmem:[%s1726_s29 + $0x40] sm:$0xff]  ;;  %v610_v15 = vld [vmem:[%s1726_s29 + $0x30] sm:$0xff]  ;;  %v609_v16 = vld [vmem:[%s1726_s29 + $0x28] sm:$0xff] }
  0xa8   : > { %1044 = vmatprep.subr.mxu0 %v1447_v2  ;;  %1077 = vmatprep.subr.mxu1 %v1447_v2  ;;  %v608_v17 = vld [vmem:[%s1726_s29 + $0x20] sm:$0xff]  ;;  %v607_v18 = vld [vmem:[%s1726_s29 + $0x18] sm:$0xff]  ;;  %v606_v19 = vld [vmem:[%s1726_s29 + $0x10] sm:$0xff] }
  0xa9   : > { %1045 = vmatpush3.msra.mxu0 %v617_v4  ;;  %1078 = vmatpush3.msra.mxu1 %v716_v7  ;;  %v605_v20 = vld [vmem:[%s1726_s29 + $0x8] sm:$0xff]  ;;  %v604_v21 = vld [vmem:[%s1726_s29] sm:$0xff]  ;;  %v603_v22 = vld [vmem:[%s1718_s4] sm:$0xff]  ;;  %p999_p7 = scmp.ne.s32.totalorder %s1946_s23, 1 }
  0xaa   : > { %1046 = vmatprep.subr.mxu0 %v1447_v2  ;;  %1079 = vmatprep.subr.mxu1 %v1447_v2  ;;  %v713_v23 = vld [vmem:[%s1743_s20 + $0x58] sm:$0xff]  ;;  %v712_v24 = vld [vmem:[%s1743_s20 + $0x50] sm:$0xff]  ;;  %v711_v25 = vld [vmem:[%s1743_s20 + $0x48] sm:$0xff]  ;;  %s1947_s10 = sld [smem:[#allocation27_spill]] (!%p999_p7) }
  0xab   : > { %1047 = vmatpush3.msra.mxu0 %v616_v5  ;;  %1080 = vmatpush3.msra.mxu1 %v715_v9  ;;  %v710_v26 = vld [vmem:[%s1743_s20 + $0x40] sm:$0xff]  ;;  %v709_v27 = vld [vmem:[%s1743_s20 + $0x38] sm:$0xff]  ;;  %v708_v28 = vld [vmem:[%s1743_s20 + $0x30] sm:$0xff] }
  0xac   : > { %1048 = vmatprep.subr.mxu0 %v1447_v2  ;;  %1081 = vmatprep.subr.mxu1 %v1447_v2  ;;  %v707_v29 = vld [vmem:[%s1743_s20 + $0x28] sm:$0xff]  ;;  %v706_v30 = vld [vmem:[%s1743_s20 + $0x20] sm:$0xff]  ;;  %v705_v31 = vld [vmem:[%s1743_s20 + $0x18] sm:$0xff] }
  0xad   : > { %1049 = vmatpush3.msra.mxu0 %v615_v8  ;;  %1082 = vmatpush3.msra.mxu1 %v714_v11  ;;  %v704_v32 = vld [vmem:[%s1743_s20 + $0x10] sm:$0xff]  ;;  %v703_v33 = vld [vmem:[%s1743_s20 + $0x8] sm:$0xff]  ;;  %v702_v34 = vld [vmem:[%s1743_s20] sm:$0xff] }
  0xae   : > { %1050 = vmatprep.subr.mxu0 %v1447_v2  ;;  %1083 = vmatprep.subr.mxu1 %v1447_v2  ;;  %v998_v35 = vld [vmem:[%s562_s11] ss:$0 sm:$0xff] }
  0xaf   : > { %1051 = vmatpush3.msra.mxu0 %v614_v10  ;;  %1084 = vmatpush3.msra.mxu1 %v713_v23  ;;  %v718_v44 = vld [vmem:[#allocation2] sm:$0xff] }
  0xb0   : > { %1052 = vmatprep.subr.mxu0 %v1447_v2  ;;  %1085 = vmatprep.subr.mxu1 %v1447_v2 }
  0xb1   : > { %1053 = vmatpush3.msra.mxu0 %v613_v12  ;;  %1086 = vmatpush3.msra.mxu1 %v712_v24 }
  0xb2   : > { %1054 = vmatprep.subr.mxu0 %v1447_v2  ;;  %1087 = vmatprep.subr.mxu1 %v1447_v2 }
  0xb3   : > { %1055 = vmatpush3.msra.mxu0 %v612_v13  ;;  %1088 = vmatpush3.msra.mxu1 %v711_v25 }
  0xb4   : > { %1056 = vmatprep.subr.mxu0 %v1447_v2  ;;  %1089 = vmatprep.subr.mxu1 %v1447_v2 }
  0xb5   : > { %1057 = vmatpush3.msra.mxu0 %v611_v14  ;;  %1090 = vmatpush3.msra.mxu1 %v710_v26 }
  0xb6   : > { %1058 = vmatprep.subr.mxu0 %v1447_v2  ;;  %1091 = vmatprep.subr.mxu1 %v1447_v2 }
  0xb7   : > { %1059 = vmatpush3.msra.mxu0 %v610_v15  ;;  %1092 = vmatpush3.msra.mxu1 %v709_v27 }
  0xb8   : > { %1060 = vmatprep.subr.mxu0 %v1447_v2  ;;  %1093 = vmatprep.subr.mxu1 %v1447_v2 }
  0xb9   : > { %1061 = vmatpush3.msra.mxu0 %v609_v16  ;;  %1094 = vmatpush3.msra.mxu1 %v708_v28 }
  0xba   : > { %1062 = vmatprep.subr.mxu0 %v1447_v2  ;;  %1095 = vmatprep.subr.mxu1 %v1447_v2 }
  0xbb   : > { %1063 = vmatpush3.msra.mxu0 %v608_v17  ;;  %1096 = vmatpush3.msra.mxu1 %v707_v29 }
  0xbc   : > { %1064 = vmatprep.subr.mxu0 %v1447_v2  ;;  %1097 = vmatprep.subr.mxu1 %v1447_v2 }
  0xbd   : > { %1065 = vmatpush3.msra.mxu0 %v607_v18  ;;  %1098 = vmatpush3.msra.mxu1 %v706_v30 }
  0xbe   : > { %1066 = vmatprep.subr.mxu0 %v1447_v2  ;;  %1099 = vmatprep.subr.mxu1 %v1447_v2 }
  0xbf   : > { %1067 = vmatpush3.msra.mxu0 %v606_v19  ;;  %1100 = vmatpush3.msra.mxu1 %v705_v31 }
  0xc0   : > { %1068 = vmatprep.subr.mxu0 %v1447_v2  ;;  %1101 = vmatprep.subr.mxu1 %v1447_v2 }
  0xc1   : > { %1069 = vmatpush3.msra.mxu0 %v605_v20  ;;  %1102 = vmatpush3.msra.mxu1 %v704_v32 }
  0xc2   : > { %1070 = vmatprep.subr.mxu0 %v1447_v2  ;;  %1103 = vmatprep.subr.mxu1 %v1447_v2 }
  0xc3   : > { %1071 = vmatpush3.msra.mxu0 %v604_v21  ;;  %1104 = vmatpush3.msra.mxu1 %v703_v33 }
  0xc4   : > { %1073 = vmatmul.mubr.f32.vlgmr.msra.gmra.mxu0 %v603_v22  ;;  %1105 = vmatprep.subr.mxu1 %v1447_v2 }
  0xc5   : > { %1106 = vmatpush3.msra.mxu1 %v702_v34 }
 0x184   : > { %v693_v36 = vpop.f32.mrf.mxu0 }
 0x185   : > { %v694_v37 = vadd.f32 %v998_v35, %v693_v36 }
 0x186   : > { %v1074_v38 = vpop.f32.mrf.mxu0 }
 0x187   : > { %v698_v39 = vmul.f32 0.70710677, %v694_v37  ;;  %v697_v41 = vmul.f32 0.5, %v694_v37 }
 0x189   : > { %1228 = verf.f32 %v698_v39 }
 0x196   : > { %v1229_v40 = vpop.eup %1228 }
 0x197   : > { %v700_v42 = vadd.f32 1.0, %v1229_v40 }
 0x199   : > { %v701_v43 = vmul.f32 %v700_v42, %v697_v41 }
 0x19b   : > { %1108 = vmatmul.mubr.f32.vlgmr.msra.gmra.mxu1 %v701_v43 }
 0x25a   : > { %794 = sbr.rel (%p999_p7) target bundleno = 617 (0x269), region = 60 }
 0x25b   : > { %v785_v45 = vpop.f32.mrf.mxu1 }
 0x25c   : > { %v789_v46 = vadd.f32 %v785_v45, %v718_v44 }
 0x25d   : > { %v1109_v47 = vpop.f32.mrf.mxu1 }
 0x25e   : > { %790 = vst [vmem:[#allocation2] sm:$0xff] %v789_v46 }
 0x25f   : > { %v1000_v49 = vld [vmem:[%s1947_s10] ss:$0 sm:$0xff] }
 0x265   : > { %v795_v48 = vld [vmem:[#allocation2] sm:$0xff] }
 0x266   : > { %v803_v50 = vadd.f32 %v1000_v49, %v795_v48 }
 0x268   : > { %804 = vst [vmem:[%s1747_s2] sm:$0xff] %v803_v50 }
 0x269 PF: > { %s1948_s25 = sld [smem:[#allocation16_spill]]  ;;  %s819_s1 = sshll.u32 %s1747_s2, 4  ;;  %s820_s1 = int_to_ptr.vmem [resolvable:$true] %s819_s1 }
 0x26a   : > { %s1949_s30 = sld [smem:[#allocation28_spill]]  ;;  %s806_s27 = scalar_lea.sflag [#allocation5], %s1712_s3 }
 0x26b   : > { %s1314_s9 = scalar_lea.vmem %s820_s1, 128  ;;  %p1950_p6 = scmp.ne.s32.totalorder %s1928_s13, 0 }
 0x26c   : > { %p1315_p4 = scmp.ne.s32.totalorder %s820_s1, %s1314_s9  ;;  %s1449_s16 = smov [#allocation9]  }
 0x26d   : > { %s1318_s24 = sshll.u32 %s1449_s16, 4  ;;  %s1319_s24 = int_to_ptr.vmem [resolvable:$false] %s1318_s24 }
 0x26e   : > { %p1316_p8 = pnand %p1315_p4, %p1950_p6  ;;  %s1320_s8 = scalar_lea.vmem %s1319_s24, 256 }
 0x26f   : > { %s1002_s14 = sshll.u32 %s1948_s25, 7  ;;  %p1321_p10 = scmp.lt.s32.totalorder %s820_s1, %s1319_s24 }
 0x270   : > { %s817_s12 = scalar_lea.hbm %s1949_s30, %s1002_s14  ;;  %p1317_p5 = pneg %p1316_p8 }
 0x271   : > { %p1322_p12 = scmp.lt.s32.totalorder %s1320_s8, %s1314_s9 }
 0x273   : > { %p1323_p3 = por %p1322_p12, %p1321_p10 }
 0x275   : > { %p1324_p2 = pnand %p1323_p3, %p1317_p5 }
 0x277   : > { %1327 = shalt.err (!%p1324_p2)
}
 0x278   : > { %s1328_s15 = scalar_lea.hbm %s817_s12, 128  ;;  %s1332_s20 = scalar_lea.hbm %s1949_s30, 256 }
 0x279   : > { %p1329_p9 = scmp.ne.s32.totalorder %s817_s12, %s1328_s15  ;;  %p1333_p11 = scmp.lt.s32.totalorder %s817_s12, %s1949_s30 }
 0x27a   : > { %p1334_p1 = scmp.lt.s32.totalorder %s1332_s20, %s1328_s15 }
 0x27b   : > { %p1330_p0 = pnand %p1329_p9, %p1950_p6 }
 0x27c   : > { %p1335_p7 = por %p1334_p1, %p1333_p11 }
 0x27d   : > { %p1331_p13 = pneg %p1330_p0 }
 0x27f   : > { %p1336_p4 = pnand %p1335_p7, %p1331_p13 }
 0x281   : > { %1339 = shalt.err (!%p1336_p4)
}
 0x282   : > { %1116 = dma.vmem_to_hbm [thread:$0]  (%p1950_p6), %s820_s1, 128, %s817_s12, %s806_s27  }
 0x283 PF: > { %s1951_s4 = sld [smem:[#allocation23_spill]]  ;;  %p1133_p8 = scmp.ge.s32.totalorder %s1438_s28, 2 }
 0x284   : > { %s831_s5 = sand.u32 1, %s1410_s21  }
 0x285   : > { %s832_s23 = scalar_lea.sflag [#allocation5], %s831_s5 }
 0x289   : > { %p1952_p5 = scmp.ne.s32.totalorder %s1951_s4, 0 }
 0x28b   : > { %p1129_p10 = pnand %p1133_p8, %p1952_p5 }
 0x28d   : > { %p1130_p12 = pneg %p1129_p10 }
 0x28f   : > { %1393 = dma.done.wait (%p1130_p12), %s832_s23, 128  }
 0x290   : > { %1395 = vsyncadd (%p1130_p12), %s832_s23, 4294967168  ;;  %s24_s28 = sadd.s32 1, %s1438_s28   ;;  %s1953_s29 = sld [smem:[#allocation13_spill]] }
 0x291   : > { %p21_p3 = scmp.ge.s32.totalorder %s24_s28, 6   ;;  %s1954_s20 = sld [smem:[#allocation21_spill]] }
 0x292   : > { %s1955_s13 = sld [smem:[#allocation14_spill]]  ;;  %s1961_s18 = smov %s1402_s19 }
 0x293   : > { %s1956_s23 = sld [smem:[#allocation22_spill]]  ;;  %s1963_s21 = smov %s1414_s22 }
 0x294   : > { %s1957_s24 = sld [smem:[#allocation17_spill]]  ;;  %23 = sbr.rel (!%p21_p3) target bundleno = 17 (0x11), region = 120 }
 0x295   : > { %s1958_s25 = sld [smem:[#allocation18_spill]] }
 0x296   : > { %s1959_s26 = sld [smem:[#allocation19_spill]]  ;;  %s1962_s19 = smov %s1953_s29 }
 0x297   : > { %s1960_s27 = sld [smem:[#allocation20_spill]] }
 0x298   : > { %s1964_s22 = smov %s1955_s13 }
 0x299   :  { %837 = vsyncpa [#allocation4], 1 }
 0x29a   :  { %839 = vsyncpa [#allocation4 + $0x1], 1 }
 0x29b   :  { %840 = vsyncpa [#allocation7], 1 }
 0x29c   :  { %842 = vsyncpa [#allocation7 + $0x1], 1 }
 0x29d   :  { %843 = vsyncpa [#allocation5], 1 }
 0x29e   :  { %845 = vsyncpa [#allocation5 + $0x1], 1 }

</bundles_post_ra>
